<compile_context>
chip_gen: v7x
topology: tpu7x:2x2x1
jax: 0.10.0
libtpu: 0.0.40
codegen_flags: <defaults>
</compile_context>

<pallas_src>
import functools

import jax
import jax.numpy as jnp
from jax.experimental import pallas as pl
from jax.experimental.pallas import tpu as pltpu


def bert_dyn_head_kernel(hs_ref, mask_ref, inv_den_ref, wdyn_blk_ref, bdyn_ref,
                         wout_t_ref, bout_ref, out_ref, acc_ref, *, L, H):
    j = pl.program_id(1)

    @pl.when(j == 0)
    def _init():
        acc_ref[...] = jnp.zeros_like(acc_ref)

    # Masked partial sum over this sequence tile.
    # hs block: (b_tile, s_tile, L*H) bf16 -> upcast to f32 (v5e has no bf16
    # VALU; accumulator must be f32 on all generations anyway).
    hs = hs_ref[...].astype(jnp.float32)
    m = mask_ref[...]                                  # (b_tile, s_tile, 1) f32
    acc_ref[...] += jnp.sum(hs * m, axis=1)            # (b_tile, L*H)

    @pl.when(j == pl.num_programs(1) - 1)
    def _epilogue():
        # Finish the masked average: multiply by the precomputed 1/sum(mask).
        hid_avg = acc_ref[...] * inv_den_ref[...]      # (b_tile, L*H)

        # dynWeight (Linear(H,1) per layer) as one MXU matmul against a
        # block-diagonal (L*H, L) weight.
        w_all = jnp.dot(hid_avg, wdyn_blk_ref[...],
                        preferred_element_type=jnp.float32) + bdyn_ref[0, 0]

        # weight_list chunk 0 == hid_avg itself (reference-code quirk);
        # chunks 1..L-1 use the repeated scalar dyn weight.  Sum of the L
        # elementwise products == concat_result of the reference.
        concat = hid_avg[:, :H] * hid_avg[:, :H]
        for l in range(1, L):
            concat = concat + w_all[:, l:l + 1] * hid_avg[:, l * H:(l + 1) * H]

        # 5x dropout + shared output Linear, averaged.  Inference-mode dropout
        # is the identity, so this equals a single Linear.
        # TODO(synk): training-mode stochastic dropout is not implemented.
        out_ref[...] = (jnp.dot(concat, wout_t_ref[...],
                                preferred_element_type=jnp.float32)
                        + bout_ref[...])


def _pick_tiles(B, S, LH, itemsize, budget_bytes=24 * 2**20):
    """Pick (b_tile, s_tile) satisfying the (8,128)/full-dim block rules and a
    rough double-buffered VMEM budget (sized for the tightest chip, v7x)."""
    if B <= 128:
        b_tile = B                       # full dim -> always a legal block dim
    else:
        b_tile = B
        for t in (128, 64, 32, 16, 8):   # multiple-of-8 divisor
            if B % t == 0:
                b_tile = t
                break
    s_tile = S                           # full dim -> always legal
    if S > 8:
        for t in (1024, 512, 256, 128, 64, 32, 16, 8):
            if t <= S and S % t == 0 and 2 * b_tile * t * LH * itemsize <= budget_bytes:
                s_tile = t
                break
    return b_tile, s_tile


def bert_dyn_head(hs, mask, wdyn, bdyn, wout, bout, *, input_dtype=jnp.bfloat16):
    """hs: (L, B, S, H) with hs[0] == hidden_states[-1] (reference loop order).
    mask: (B, S).  wdyn: (1, H), bdyn: (1, 1), wout: (n_class, H), bout: (1, n_class)."""
    L, B, S, H = hs.shape
    n_class = wout.shape[0]
    LH = L * H
    NPAD = pl.cdiv(n_class, 128) * 128   # lane-dense output / weight padding

    # Lane-dense relayout (B, S, L*H); bf16 halves HBM traffic of the one-pass read.
    hs_lane = jnp.transpose(hs, (1, 2, 0, 3)).reshape(B, S, LH).astype(input_dtype)
    maskf = mask.astype(jnp.float32)
    mask3 = maskf[:, :, None]                                    # (B, S, 1): S on sublanes
    inv_den = 1.0 / jnp.sum(maskf, axis=1, keepdims=True)        # (B, 1)

    # Block-diagonal dynWeight so the per-layer H-reductions become one MXU matmul.
    eye_L = jnp.eye(L, dtype=jnp.float32)
    wdyn_block = (eye_L[:, None, :] * wdyn[0][None, :, None]).reshape(LH, L)

    wout_t_pad = jnp.zeros((H, NPAD), jnp.float32).at[:, :n_class].set(wout.T)
    bout_pad = jnp.zeros((1, NPAD), jnp.float32).at[:, :n_class].set(bout)

    b_tile, s_tile = _pick_tiles(B, S, LH, jnp.dtype(input_dtype).itemsize)
    grid = (B // b_tile, S // s_tile)

    cost = pl.CostEstimate(
        flops=2 * L * B * S * H + 2 * B * LH * L + 2 * B * H * NPAD,
        transcendentals=0,
        bytes_accessed=(hs_lane.size * hs_lane.dtype.itemsize
                        + mask3.size * 4 + B * NPAD * 4
                        + (LH * L + H * NPAD) * 4),
    )

    out = pl.pallas_call(
        functools.partial(bert_dyn_head_kernel, L=L, H=H),
        out_shape=jax.ShapeDtypeStruct((B, NPAD), jnp.float32),
        grid_spec=pltpu.PrefetchScalarGridSpec(
            num_scalar_prefetch=0,
            grid=grid,
            in_specs=[
                # hs: one lane-dense slab per (batch, seq) tile.
                pl.BlockSpec((b_tile, s_tile, LH), lambda i, j: (i, j, 0)),
                # mask, already (B, S, 1) so S rides the sublanes like hs.
                pl.BlockSpec((b_tile, s_tile, 1), lambda i, j: (i, j, 0)),
                # 1 / sum(mask) per batch row (precomputed in the wrapper).
                pl.BlockSpec((b_tile, 1), lambda i, j: (i, 0)),
                # VMEM-resident weights (constant block index -> no re-DMA).
                pl.BlockSpec((LH, L), lambda i, j: (0, 0)),
                # True scalar bias lives in SMEM.
                pl.BlockSpec(memory_space=pltpu.MemorySpace.SMEM),
                pl.BlockSpec((H, NPAD), lambda i, j: (0, 0)),
                pl.BlockSpec((1, NPAD), lambda i, j: (0, 0)),
            ],
            out_specs=pl.BlockSpec((b_tile, NPAD), lambda i, j: (i, 0)),
            scratch_shapes=[pltpu.VMEM((b_tile, LH), jnp.float32)],
        ),
        compiler_params=pltpu.CompilerParams(
            dimension_semantics=("parallel", "arbitrary"),
            vmem_limit_bytes=32 * 1024 * 1024,
        ),
        cost_estimate=cost,
    )(hs_lane, mask3, inv_den, wdyn_block, bdyn.astype(jnp.float32),
      wout_t_pad, bout_pad)

    return out[:, :n_class]


def reference_jax(hs, mask, wdyn, bdyn, wout, bout):
    m = mask[None, :, :, None]
    hid_avg = jnp.sum(hs * m, axis=2) / jnp.sum(mask, axis=1)[None, :, None]
    w = jnp.einsum("lbh,h->lb", hid_avg, wdyn[0]) + bdyn[0, 0]
    term0 = hid_avg[0] * hid_avg[0]
    rest = jnp.sum(w[1:, :, None] * hid_avg[1:], axis=0)
    concat_result = term0 + rest
    return concat_result @ wout.T + bout


if __name__ == "__main__":
    # TODO(synk): the pretrained BERT/NeZha encoder itself has no clean Pallas
    # equivalent here; its hidden_states are synthesized as kernel inputs.
    L, B, S, H, n_class = 6, 2, 8, 32, 36

    key = jax.random.PRNGKey(0)
    k1, k2, k3, k4 = jax.random.split(key, 4)

    # Synthetic "last 6 hidden layers" (reverse order: hidden_states[-1] first).
    hs = jax.random.normal(k1, (L, B, S, H), jnp.float32)

    # Attention mask with some padding on the second example.
    lengths = jnp.array([S, 5], jnp.int32)
    mask = (jnp.arange(S)[None, :] < lengths[:, None]).astype(jnp.float32)

    # Deterministic parameter init (Linear shapes per the module __init__).
    wdyn = 0.02 * jax.random.normal(k2, (1, H), jnp.float32)        # dynWeight.weight
    bdyn = jnp.full((1, 1), 0.01, jnp.float32)                      # dynWeight.bias
    wout = 0.02 * jax.random.normal(k3, (n_class, H), jnp.float32)  # output.weight
    bout = 0.02 * jax.random.normal(k4, (1, n_class), jnp.float32)  # output.bias

    logits = bert_dyn_head(hs, mask, wdyn, bdyn, wout, bout)
    logits = jax.block_until_ready(logits)

    # Reference over the same bf16-quantized hidden states (the kernel reads hs
    # as bf16 and accumulates in f32).
    hs_q = hs.astype(jnp.bfloat16).astype(jnp.float32)
    ref = reference_jax(hs_q, mask, wdyn, bdyn, wout, bout)

    assert logits.shape == (B, n_class)
    assert jnp.allclose(logits, ref, atol=1e-3, rtol=1e-2), "mismatch vs JAX reference"

    print("KERNEL_OK")
</pallas_src>

<mosaic_0001>
module attributes {stable_mosaic.version = 11 : i64} {
  func.func @bert_dyn_head_kernel(%arg0: i32, %arg1: i32, %arg2: memref<2x8x192xbf16, #tpu.memory_space<vmem>>, %arg3: memref<2x8x1xf32, #tpu.memory_space<vmem>>, %arg4: memref<2x1xf32, #tpu.memory_space<vmem>>, %arg5: memref<192x6xf32, #tpu.memory_space<vmem>>, %arg6: memref<1x1xf32, #tpu.memory_space<smem>>, %arg7: memref<32x128xf32, #tpu.memory_space<vmem>>, %arg8: memref<1x128xf32, #tpu.memory_space<vmem>>, %arg9: memref<2x128xf32, #tpu.memory_space<vmem>>, %arg10: memref<2x192xf32, #tpu.memory_space<vmem>>) attributes {dimension_semantics = [#tpu.dimension_semantics<parallel>, #tpu.dimension_semantics<arbitrary>], iteration_bounds = array<i64: 1, 1>, scalar_prefetch = 0 : i64, scratch_operands = 1 : i64, tpu.core_type = #tpu.core_type<tc>, window_params = [{transform_indices = @transform_0, window_bounds = array<i64: 2, 8, 192>}, {transform_indices = @transform_1, window_bounds = array<i64: 2, 8, 1>}, {transform_indices = @transform_2, window_bounds = array<i64: 2, 1>}, {pipeline_mode = #tpu.pipeline_mode<synchronous>, transform_indices = @transform_3, window_bounds = array<i64: 192, 6>}, {transform_indices = @transform_4, window_bounds = array<i64: 1, 1>}, {pipeline_mode = #tpu.pipeline_mode<synchronous>, transform_indices = @transform_5, window_bounds = array<i64: 32, 128>}, {pipeline_mode = #tpu.pipeline_mode<synchronous>, transform_indices = @transform_6, window_bounds = array<i64: 1, 128>}, {transform_indices = @transform_7, window_bounds = array<i64: 2, 128>}]} {
    %c0_i32 = arith.constant 0 : i32
    %0 = arith.cmpi eq, %arg1, %c0_i32 : i32
    %1 = arith.extui %0 : i1 to i32
    %c0_i32_0 = arith.constant 0 : i32
    %2 = arith.cmpi ne, %1, %c0_i32_0 : i32
    scf.if %2 {
      %cst_12 = arith.constant 0.000000e+00 : f32
      %15 = vector.broadcast %cst_12 : f32 to vector<2x192xf32>
      %c0_13 = arith.constant 0 : index
      %c0_14 = arith.constant 0 : index
      %16 = vector.load %arg10[%c0_13, %c0_14] : memref<2x192xf32, #tpu.memory_space<vmem>>, vector<2x192xf32>
      tpu.vector_store %arg10[%c0_13, %c0_14], %15 {strides = array<i32>} : memref<2x192xf32, #tpu.memory_space<vmem>>, vector<2x192xf32>,
    } else {
    }
    %c0 = arith.constant 0 : index
    %c0_1 = arith.constant 0 : index
    %c0_2 = arith.constant 0 : index
    %3 = vector.load %arg2[%c0, %c0_1, %c0_2] : memref<2x8x192xbf16, #tpu.memory_space<vmem>>, vector<2x8x192xbf16>
    %4 = arith.extf %3 : vector<2x8x192xbf16> to vector<2x8x192xf32>
    %c0_3 = arith.constant 0 : index
    %c0_4 = arith.constant 0 : index
    %c0_5 = arith.constant 0 : index
    %5 = vector.load %arg3[%c0_3, %c0_4, %c0_5] : memref<2x8x1xf32, #tpu.memory_space<vmem>>, vector<2x8x1xf32>
    %c0_6 = arith.constant 0 : index
    %c0_7 = arith.constant 0 : index
    %6 = vector.load %arg10[%c0_6, %c0_7] : memref<2x192xf32, #tpu.memory_space<vmem>>, vector<2x192xf32>
    %7 = vector.broadcast %5 : vector<2x8x1xf32> to vector<2x8x192xf32>
    %8 = arith.mulf %4, %7 : vector<2x8x192xf32>
    %cst = arith.constant dense<0.000000e+00> : vector<2x192xf32>
    %9 = vector.multi_reduction <add>, %8, %cst [1] : vector<2x8x192xf32> to vector<2x192xf32>
    %10 = arith.addf %6, %9 : vector<2x192xf32>
    %c0_8 = arith.constant 0 : index
    %c0_9 = arith.constant 0 : index
    %11 = vector.load %arg10[%c0_8, %c0_9] : memref<2x192xf32, #tpu.memory_space<vmem>>, vector<2x192xf32>
    tpu.vector_store %arg10[%c0_8, %c0_9], %10 {strides = array<i32>} : memref<2x192xf32, #tpu.memory_space<vmem>>, vector<2x192xf32>,
    %c0_i32_10 = arith.constant 0 : i32
    %12 = arith.cmpi eq, %arg1, %c0_i32_10 : i32
    %13 = arith.extui %12 : i1 to i32
    %c0_i32_11 = arith.constant 0 : i32
    %14 = arith.cmpi ne, %13, %c0_i32_11 : i32
    scf.if %14 {
      %c0_12 = arith.constant 0 : index
      %c0_13 = arith.constant 0 : index
      %15 = vector.load %arg10[%c0_12, %c0_13] : memref<2x192xf32, #tpu.memory_space<vmem>>, vector<2x192xf32>
      %c0_14 = arith.constant 0 : index
      %c0_15 = arith.constant 0 : index
      %16 = vector.load %arg4[%c0_14, %c0_15] : memref<2x1xf32, #tpu.memory_space<vmem>>, vector<2x1xf32>
      %17 = vector.broadcast %16 : vector<2x1xf32> to vector<2x192xf32>
      %18 = arith.mulf %15, %17 : vector<2x192xf32>
      %c0_16 = arith.constant 0 : index
      %c0_17 = arith.constant 0 : index
      %19 = vector.load %arg5[%c0_16, %c0_17] : memref<192x6xf32, #tpu.memory_space<vmem>>, vector<192x6xf32>
      %cst_18 = arith.constant dense<0.000000e+00> : vector<2x6xf32>
      %20 = tpu.matmul %18, %19, %cst_18 {dimension_numbers = #tpu.dot_dimension_numbers<[1], [0], [0], [1], [0, 0, 1, 1], [], []>} : vector<2x192xf32>, vector<192x6xf32>, vector<2x6xf32> -> vector<2x6xf32>
      %c0_19 = arith.constant 0 : index
      %c0_20 = arith.constant 0 : index
      %21 = memref.load %arg6[%c0_19, %c0_20] : memref<1x1xf32, #tpu.memory_space<smem>>
      %22 = vector.broadcast %21 : f32 to vector<2x6xf32>
      %23 = arith.addf %20, %22 : vector<2x6xf32>
      %24 = vector.extract_strided_slice %18 {offsets = [0, 0], sizes = [2, 32], strides = [1, 1]} : vector<2x192xf32> to vector<2x32xf32>
      %25 = vector.extract_strided_slice %18 {offsets = [0, 0], sizes = [2, 32], strides = [1, 1]} : vector<2x192xf32> to vector<2x32xf32>
      %26 = arith.mulf %24, %25 : vector<2x32xf32>
      %27 = vector.extract_strided_slice %23 {offsets = [0, 1], sizes = [2, 1], strides = [1, 1]} : vector<2x6xf32> to vector<2x1xf32>
      %28 = vector.extract_strided_slice %18 {offsets = [0, 32], sizes = [2, 32], strides = [1, 1]} : vector<2x192xf32> to vector<2x32xf32>
      %29 = vector.broadcast %27 : vector<2x1xf32> to vector<2x32xf32>
      %30 = arith.mulf %29, %28 : vector<2x32xf32>
      %31 = arith.addf %26, %30 : vector<2x32xf32>
      %32 = vector.extract_strided_slice %23 {offsets = [0, 2], sizes = [2, 1], strides = [1, 1]} : vector<2x6xf32> to vector<2x1xf32>
      %33 = vector.extract_strided_slice %18 {offsets = [0, 64], sizes = [2, 32], strides = [1, 1]} : vector<2x192xf32> to vector<2x32xf32>
      %34 = vector.broadcast %32 : vector<2x1xf32> to vector<2x32xf32>
      %35 = arith.mulf %34, %33 : vector<2x32xf32>
      %36 = arith.addf %31, %35 : vector<2x32xf32>
      %37 = vector.extract_strided_slice %23 {offsets = [0, 3], sizes = [2, 1], strides = [1, 1]} : vector<2x6xf32> to vector<2x1xf32>
      %38 = vector.extract_strided_slice %18 {offsets = [0, 96], sizes = [2, 32], strides = [1, 1]} : vector<2x192xf32> to vector<2x32xf32>
      %39 = vector.broadcast %37 : vector<2x1xf32> to vector<2x32xf32>
      %40 = arith.mulf %39, %38 : vector<2x32xf32>
      %41 = arith.addf %36, %40 : vector<2x32xf32>
      %42 = vector.extract_strided_slice %23 {offsets = [0, 4], sizes = [2, 1], strides = [1, 1]} : vector<2x6xf32> to vector<2x1xf32>
      %43 = vector.extract_strided_slice %18 {offsets = [0, 128], sizes = [2, 32], strides = [1, 1]} : vector<2x192xf32> to vector<2x32xf32>
      %44 = vector.broadcast %42 : vector<2x1xf32> to vector<2x32xf32>
      %45 = arith.mulf %44, %43 : vector<2x32xf32>
      %46 = arith.addf %41, %45 : vector<2x32xf32>
      %47 = vector.extract_strided_slice %23 {offsets = [0, 5], sizes = [2, 1], strides = [1, 1]} : vector<2x6xf32> to vector<2x1xf32>
      %48 = vector.extract_strided_slice %18 {offsets = [0, 160], sizes = [2, 32], strides = [1, 1]} : vector<2x192xf32> to vector<2x32xf32>
      %49 = vector.broadcast %47 : vector<2x1xf32> to vector<2x32xf32>
      %50 = arith.mulf %49, %48 : vector<2x32xf32>
      %51 = arith.addf %46, %50 : vector<2x32xf32>
      %c0_21 = arith.constant 0 : index
      %c0_22 = arith.constant 0 : index
      %52 = vector.load %arg7[%c0_21, %c0_22] : memref<32x128xf32, #tpu.memory_space<vmem>>, vector<32x128xf32>
      %cst_23 = arith.constant dense<0.000000e+00> : vector<2x128xf32>
      %53 = tpu.matmul %51, %52, %cst_23 {dimension_numbers = #tpu.dot_dimension_numbers<[1], [0], [0], [1], [0, 0, 1, 1], [], []>} : vector<2x32xf32>, vector<32x128xf32>, vector<2x128xf32> -> vector<2x128xf32>
      %c0_24 = arith.constant 0 : index
      %c0_25 = arith.constant 0 : index
      %54 = vector.load %arg8[%c0_24, %c0_25] : memref<1x128xf32, #tpu.memory_space<vmem>>, vector<1x128xf32>
      %55 = vector.broadcast %54 : vector<1x128xf32> to vector<2x128xf32>
      %56 = arith.addf %53, %55 : vector<2x128xf32>
      %c0_26 = arith.constant 0 : index
      %c0_27 = arith.constant 0 : index
      %57 = vector.load %arg9[%c0_26, %c0_27] : memref<2x128xf32, #tpu.memory_space<vmem>>, vector<2x128xf32>
      tpu.vector_store %arg9[%c0_26, %c0_27], %56 {strides = array<i32>} : memref<2x128xf32, #tpu.memory_space<vmem>>, vector<2x128xf32>,
    } else {
    }
    return
  }
  func.func @transform_0(%arg0: i32, %arg1: i32) -> (i32, i32, i32) {
    %c0_i32 = arith.constant 0 : i32
    %c0_i32_0 = arith.constant 0 : i32
    return %arg0, %arg1, %c0_i32 : i32, i32, i32
  }
  func.func @transform_1(%arg0: i32, %arg1: i32) -> (i32, i32, i32) {
    %c0_i32 = arith.constant 0 : i32
    %c0_i32_0 = arith.constant 0 : i32
    return %arg0, %arg1, %c0_i32 : i32, i32, i32
  }
  func.func @transform_2(%arg0: i32, %arg1: i32) -> (i32, i32) {
    %c0_i32 = arith.constant 0 : i32
    %c0_i32_0 = arith.constant 0 : i32
    return %arg0, %c0_i32 : i32, i32
  }
  func.func @transform_3(%arg0: i32, %arg1: i32) -> (i32, i32) {
    %c0_i32 = arith.constant 0 : i32
    %c0_i32_0 = arith.constant 0 : i32
    %c0_i32_1 = arith.constant 0 : i32
    return %c0_i32, %c0_i32_0 : i32, i32
  }
  func.func @transform_4(%arg0: i32, %arg1: i32) -> (i32, i32) {
    %c0_i32 = arith.constant 0 : i32
    %c0_i32_0 = arith.constant 0 : i32
    %c0_i32_1 = arith.constant 0 : i32
    return %c0_i32, %c0_i32_0 : i32, i32
  }
  func.func @transform_5(%arg0: i32, %arg1: i32) -> (i32, i32) {
    %c0_i32 = arith.constant 0 : i32
    %c0_i32_0 = arith.constant 0 : i32
    %c0_i32_1 = arith.constant 0 : i32
    return %c0_i32, %c0_i32_0 : i32, i32
  }
  func.func @transform_6(%arg0: i32, %arg1: i32) -> (i32, i32) {
    %c0_i32 = arith.constant 0 : i32
    %c0_i32_0 = arith.constant 0 : i32
    %c0_i32_1 = arith.constant 0 : i32
    return %c0_i32, %c0_i32_0 : i32, i32
  }
  func.func @transform_7(%arg0: i32, %arg1: i32) -> (i32, i32) {
    %c0_i32 = arith.constant 0 : i32
    %c0_i32_0 = arith.constant 0 : i32
    return %arg0, %c0_i32 : i32, i32
  }
}

</mosaic_0001>

<bundles_post_ra>
// kernel: tpu_custom_call.1
= control target key start
LH: loop header
LB: loop body
LE: loop exit
PB: predicated region body
PF: predicated region fallthrough
CT: control target
= control target key end

     0   :  { %v504_v2 = vmov 0   ;;  %s703_s0 = inlined_call_operand.vmem [shape: bf16[2,8,192], index: 0, kind: input, shape index: {}]   ;;  %s704_s1 = inlined_call_operand.vmem [shape: f32[2,8,1], index: 1, kind: input, shape index: {}]   ;;  %s705_s2 = inlined_call_operand.vmem [shape: f32[2,1], index: 2, kind: input, shape index: {}]   ;;  %s706_s3 = inlined_call_operand.vmem [shape: f32[192,6], index: 3, kind: input, shape index: {}]   ;;  %s707_s4 = inlined_call_operand.<no memory space> [shape: f32[1,1], index: 4, kind: input, shape index: {}]   ;;  %s708_s5 = inlined_call_operand.vmem [shape: f32[32,128], index: 5, kind: input, shape index: {}]   ;;  %s709_s6 = inlined_call_operand.vmem [shape: f32[1,128], index: 6, kind: input, shape index: {}]   ;;  %s710_s7 = inlined_call_operand.hbm [shape: f32[2,128], index: 7, kind: output, shape index: {}]  }
   0x1   :  { %v43_v0 = vld [vmem:[%s704_s1 + $0x8] sm:$0xff]  ;;  %v129_v1 = vld [vmem:[%s705_s2] sm:$0x3]  ;;  %472 = vset.pattern.permute.xlu0 %v504_v2  ;;  %473 = vset.pattern.permute.xlu1 %v504_v2  ;;  %v145_v6 = vld [vmem:[%s706_s3 + $0x10] sm:$0xff] }
   0x2   :  { %v143_v3 = vld [vmem:[%s706_s3] sm:$0xff]  ;;  %v144_v4 = vld [vmem:[%s706_s3 + $0x8] sm:$0xff]  ;;  %52 = vperm.xlu0 %472, %v43_v0   ;;  %132 = vperm.xlu1 %473, %v129_v1   ;;  %v146_v7 = vld [vmem:[%s706_s3 + $0x18] sm:$0xff] }
   0x3   :  { %v416_v5 = vpack.c.bf16 %v144_v4, %v143_v3 }
   0x4   :  { %13 = vsyncpa [#allocation5], 0  ;;  %v42_v8 = vld [vmem:[%s704_s1] sm:$0xff]  ;;  %v505_v9 = vmov 0.0|0.0   ;;  %v419_v10 = vpack.c.bf16 %v146_v7, %v145_v6  ;;  %v148_v12 = vld [vmem:[%s706_s3 + $0x28] sm:$0xff]  ;;  %vm32_vm0 = vcmask 1041408   ;;  %v94_v62 = vlaneseq }
   0x5   :  { %415 = vmatprep.subr.bf16.mxu0 %v505_v9  ;;  %451 = vmatprep.subr.bf16.mxu1 %v505_v9  ;;  %v147_v11 = vld [vmem:[%s706_s3 + $0x20] sm:$0xff]  ;;  %v149_v14 = vld [vmem:[%s706_s3 + $0x30] sm:$0xff]  ;;  %v150_v15 = vld [vmem:[%s706_s3 + $0x38] sm:$0xff]  ;;  %vm33_vm1 = vcmask 519170   ;;  %v506_v26 = vmov 0.0   ;;  %vm65_vm3 = vcmask 523264   ;;  %v168_v23 = vstv %s707_s4 }
   0x6   :  { %417 = vmatpush1.bf16.msra.mxu0 %v416_v5  ;;  %47 = vperm.xlu0 %472, %v42_v8   ;;  %v422_v13 = vpack.c.bf16 %v148_v12, %v147_v11  ;;  %v425_v16 = vpack.c.bf16 %v150_v15, %v149_v14  ;;  %v151_v17 = vld [vmem:[%s706_s3 + $0x40] sm:$0xff]  ;;  %v152_v18 = vld [vmem:[%s706_s3 + $0x48] sm:$0xff]  ;;  %v153_v20 = vld [vmem:[%s706_s3 + $0x50] sm:$0xff]  ;;  %v507_v60 = vmov 1983009808   ;;  %vm111_vm4 = vcmask 1041409  }
   0x7   :  { %418 = vmatprep.subr.bf16.mxu0 %v505_v9  ;;  %v428_v19 = vpack.c.bf16 %v152_v18, %v151_v17  ;;  %v154_v21 = vld [vmem:[%s706_s3 + $0x58] sm:$0xff]  ;;  %vm610_vm2 = vmor %vm33_vm1, %vm32_vm0  ;;  %v155_v24 = vld [vmem:[%s706_s3 + $0x60] sm:$0xff]  ;;  %v92_v61 = vunpack.c.l.s4 %v507_v60  ;;  %vm113_vm5 = vcmask 1043459   ;;  %vm115_vm6 = vcmask 1045509   ;;  %s512_s10 = smov 64   ;;  %s516_s13 = smov 32  }
   0x8   :  { %v431_v22 = vpack.c.bf16 %v154_v21, %v153_v20  ;;  %v156_v25 = vld [vmem:[%s706_s3 + $0x68] sm:$0xff]  ;;  %35 = vst.msk [vmem:[#allocation2] sm:$0xf] %vm610_vm2, %v506_v26  ;;  %v157_v28 = vld [vmem:[%s706_s3 + $0x70] sm:$0xff]  ;;  %v158_v29 = vld [vmem:[%s706_s3 + $0x78] sm:$0xff]  ;;  %vm117_vm7 = vcmask 1047559  }
   0x9   :  { %v434_v27 = vpack.c.bf16 %v156_v25, %v155_v24  ;;  %v437_v30 = vpack.c.bf16 %v158_v29, %v157_v28  ;;  %v159_v31 = vld [vmem:[%s706_s3 + $0x80] sm:$0xff]  ;;  %v160_v32 = vld [vmem:[%s706_s3 + $0x88] sm:$0xff]  ;;  %v161_v34 = vld [vmem:[%s706_s3 + $0x90] sm:$0xff]  ;;  %v93_v8 = vunpack.c.0.s8 %v92_v61  ;;  %v508_v29 = vmov 269488144   ;;  %s518_s18 = smov [#allocation4]  }
   0xa   :  { %420 = vmatpush1.bf16.msra.mxu0 %v419_v10  ;;  %v440_v33 = vpack.c.bf16 %v160_v32, %v159_v31  ;;  %v162_v35 = vld [vmem:[%s706_s3 + $0x98] sm:$0xff]  ;;  %v163_v37 = vld [vmem:[%s706_s3 + $0xa0] sm:$0xff]  ;;  %v164_v38 = vld [vmem:[%s706_s3 + $0xa8] sm:$0xff]  ;;  %v95_v10 = vshrl.u32 %v94_v62, 7  ;;  %vm517_vm8 = vmmov 0   ;;  %vm307_vm9 = vcmask 261120  }
   0xb   :  { %421 = vmatprep.subr.bf16.mxu0 %v505_v9  ;;  %v443_v36 = vpack.c.bf16 %v162_v35, %v161_v34  ;;  %v446_v39 = vpack.c.bf16 %v164_v38, %v163_v37  ;;  %v165_v40 = vld [vmem:[%s706_s3 + $0xb0] sm:$0xff]  ;;  %v166_v41 = vld [vmem:[%s706_s3 + $0xb8] sm:$0xff]  ;;  %v37_v43 = vld [vmem:[%s703_s0 + $0x8] sm:$0xff]  ;;  %412 = vmatprep.mubr.msk.f32.mxu1 %vm517_vm8, %v506_v26  ;;  %s388_s19 = sshll.u32 %s518_s18, 4  ;;  %s389_s19 = int_to_ptr.vmem [resolvable:$true] %s388_s19 }
   0xc   :  { %v449_v42 = vpack.c.bf16 %v166_v41, %v165_v40  ;;  %v40_v44 = vunpack.c.l.bf16 %v37_v43  ;;  %v41_v45 = vunpack.c.h.bf16 %v37_v43  ;;  %v36_v46 = vld [vmem:[%s703_s0] sm:$0xff]  ;;  %s509_s0 = smov 96   ;;  %s480_s20 = scalar_lea.vmem %s389_s19, 32 }
   0xd   :  { %v38_v50 = vunpack.c.l.bf16 %v36_v46  ;;  %v39_v51 = vunpack.c.h.bf16 %v36_v46  ;;  %p481_p0 = scmp.ne.s32.totalorder %s389_s19, %s480_s20  ;;  %p485_p1 = scmp.lt.s32.totalorder %s389_s19, %s389_s19 }
   0xe   :  { %423 = vmatpush1.bf16.msra.mxu0 %v422_v13  ;;  %p486_p2 = scmp.lt.s32.totalorder %s480_s20, %s480_s20 }
   0xf   :  { %424 = vmatprep.subr.bf16.mxu0 %v505_v9  ;;  %v44_v34 = vld [vmem:[#allocation2] sm:$0xf] }
  0x10   :  { %p487_p3 = por %p486_p2, %p485_p1 }
  0x12   :  { %426 = vmatpush1.bf16.msra.mxu0 %v425_v16  ;;  %p488_p4 = pnand %p487_p3, %p481_p0 }
  0x13   :  { %427 = vmatprep.subr.bf16.mxu0 %v505_v9 }
  0x16   :  { %429 = vmatpush1.bf16.msra.mxu0 %v428_v19  ;;  %v96_v19 = vsub.s32 %v93_v8, %v95_v10 }
  0x17   :  { %430 = vmatprep.subr.bf16.mxu0 %v505_v9 }
  0x1a   :  { %432 = vmatpush1.bf16.msra.mxu0 %v431_v22 }
  0x1b   :  { %433 = vmatprep.subr.bf16.mxu0 %v505_v9 }
  0x1e   :  { %435 = vmatpush1.bf16.msra.mxu0 %v434_v27 }
  0x1f   :  { %436 = vmatprep.subr.bf16.mxu0 %v505_v9 }
  0x22   :  { %438 = vmatpush1.bf16.msra.mxu0 %v437_v30  ;;  %v135_v30 = vunpack.c.l.s4 %v508_v29 }
  0x23   :  { %439 = vmatprep.subr.bf16.mxu0 %v505_v9 }
  0x26   :  { %441 = vmatpush1.bf16.msra.mxu0 %v440_v33 }
  0x27   :  { %442 = vmatprep.subr.bf16.mxu0 %v505_v9 }
  0x2a   :  { %444 = vmatpush1.bf16.msra.mxu0 %v443_v36  ;;  %v136_v36 = vunpack.c.0.s8 %v135_v30 }
  0x2b   :  { %445 = vmatprep.subr.bf16.mxu0 %v505_v9 }
  0x2c   :  { %v139_v40 = vsub.s32 %v136_v36, %v95_v10 }
  0x2e   :  { %447 = vmatpush1.bf16.msra.mxu0 %v446_v39 }
  0x2f   :  { %448 = vmatprep.subr.bf16.mxu0 %v505_v9 }
  0x32   :  { %450 = vmatpush1.bf16.msra.mxu0 %v449_v42 }
  0x81   :  { %v53_v47 = vpop.permute.xlu0 %52  ;;  %v133_v41 = vpop.permute.xlu1 %132 }
  0x82   :  { %v57_v48 = vmul.f32 %v53_v47, %v40_v44  ;;  %v58_v49 = vmul.f32 %v53_v47, %v41_v45  ;;  %v140_v42 = vrot.slane %v133_v41, %v139_v40  ;;  %v510_v47 = vmov 1  }
  0x83   :  { %474 = vset.pattern.permute.xlu1 %v510_v47 }
  0x84   :  { %v73_v52 = vrot.slane %v57_v48, 4  ;;  %v79_v53 = vsel %vm65_vm3, %v58_v49, 0.0 }
  0x85   :  { %v80_v54 = vrot.slane %v79_v53, 4  ;;  %v48_v55 = vpop.permute.xlu0 %47 }
  0x86   :  { %v74_v56 = vadd.f32 %v73_v52, %v57_v48  ;;  %v55_v57 = vmul.f32 %v48_v55, %v38_v50  ;;  %v56_v58 = vmul.f32 %v48_v55, %v39_v51  ;;  %v511_v48 = vmov 2   ;;  %v296_v55 = vld [vmem:[%s708_s5] sm:$0xff] }
  0x87   :  { %v81_v59 = vadd.f32 %v80_v54, %v79_v53  ;;  %475 = vset.pattern.permute.xlu0 %v511_v48  ;;  %v513_v52 = vmov 3   ;;  %v514_v53 = vmov 5   ;;  %v515_v54 = vmov 4  }
  0x88   :  { %v75_v63 = vrot.slane %v74_v56, 2  ;;  %v59_v0 = vrot.slane %v55_v57, 4  ;;  %v66_v1 = vsel %vm65_vm3, %v56_v58, 0.0  ;;  %v298_v58 = vld [vmem:[%s708_s5 + $0x10] sm:$0xff] }
  0x89   :  { %v82_v2 = vrot.slane %v81_v59, 2  ;;  %v67_v3 = vrot.slane %v66_v1, 4 }
  0x8a   :  { %v76_v4 = vadd.f32 %v75_v63, %v74_v56  ;;  %v60_v5 = vadd.f32 %v59_v0, %v55_v57  ;;  %v297_v56 = vld [vmem:[%s708_s5 + $0x8] sm:$0xff] }
  0x8b   :  { %v83_v6 = vadd.f32 %v82_v2, %v81_v59  ;;  %v68_v7 = vadd.f32 %v67_v3, %v66_v1  ;;  %v452_v57 = vpack.c.bf16 %v297_v56, %v296_v55  ;;  %v299_v59 = vld [vmem:[%s708_s5 + $0x18] sm:$0xff] }
  0x8c   :  { %v77_v11 = vrot.slane %v76_v4, 1  ;;  %v61_v12 = vrot.slane %v60_v5, 2  ;;  %v455_v60 = vpack.c.bf16 %v299_v59, %v298_v58 }
  0x8d   :  { %v84_v13 = vrot.slane %v83_v6, 1  ;;  %v69_v14 = vrot.slane %v68_v7, 2  ;;  %453 = vmatpush3.bf16.msra.mxu1 %v452_v57 }
  0x8e   :  { %v78_v15 = vadd.f32 %v77_v11, %v76_v4  ;;  %v62_v16 = vadd.f32 %v61_v12, %v60_v5  ;;  %454 = vmatprep.subr.bf16.mxu1 %v505_v9 }
  0x8f   :  { %v85_v17 = vadd.f32 %v84_v13, %v83_v6  ;;  %v70_v18 = vadd.f32 %v69_v14, %v68_v7 }
  0x90   :  { %v63_v20 = vrot.slane %v62_v16, 1 }
  0x91   :  { %v98_v21 = vcombine.low %v78_v15, %v85_v17  ;;  %v71_v22 = vrot.slane %v70_v18, 1  ;;  %456 = vmatpush3.bf16.msra.mxu1 %v455_v60 }
  0x92   :  { %v64_v24 = vadd.f32 %v63_v20, %v62_v16  ;;  %v397_v16 = vld [vmem:[%s709_s6] ss:$0 sm:$0xff] }
  0x93   :  { %v72_v25 = vadd.f32 %v71_v22, %v70_v18  ;;  %v105_v27 = vrot.slane %v98_v21, %v96_v19 }
  0x95   :  { %v90_v28 = vcombine.low %v64_v24, %v72_v25  ;;  %v110_v32 = vrot.slane %v105_v27, 7 }
  0x97   :  { %v97_v31 = vrot.slane %v90_v28, %v96_v19 }
  0x99   :  { %v112_v33 = vsel %vm111_vm4, %v110_v32, %v97_v31 }
  0x9a   :  { %v114_v35 = vsel %vm113_vm5, %v110_v32, %v112_v33 }
  0x9b   :  { %v116_v37 = vsel %vm115_vm6, %v110_v32, %v114_v35 }
  0x9c   :  { %v118_v38 = vsel %vm117_vm7, %v110_v32, %v116_v37 }
  0x9d   :  { %v120_v39 = vadd.f32 %v118_v38, %v44_v34 }
  0x9f   :  { %124 = vst.msk [vmem:[#allocation2] sm:$0xf] %vm610_vm2, %v120_v39 }
  0xa6   :  { %v128_v43 = vld [vmem:[#allocation2] sm:$0xf] }
  0xa7   :  { %v142_v44 = vmul.f32 %v140_v42, %v128_v43 }
  0xa9   :  { %v176_v45 = vrot.slane %v142_v44, %v96_v19  ;;  %v251_v4 = vmul.f32 %v142_v44, %v142_v44 }
  0xab   :  { %257 = vrot.lane.b32.xlu0 %v176_v45, %s509_s0  ;;  %v177_v46 = vcombine.high %v176_v45, %v176_v45 }
  0xad   :  { %396 = vmatprep.mubr.msk.f32.mxu0 %vm65_vm3, %v177_v46 }
  0xae   :  { %246 = vmatmul.mubr.f32.vlgmr.msra.gmra.mrb[0].mxu0 %v176_v45 }
 0x11d   :  { %v258_v62 = vpop.permute.xlu0 %257 }
 0x181   :  { %v247_v49 = vpop.f32.mrb[0].mxu0 }
 0x182   :  { %v248_v50 = vadd.f32 %v247_v49, %v168_v23  ;;  %v249_v51 = vpop.f32.mrb[1].mxu0 }
 0x184   :  { %263 = vperm.xlu0 %475, %v248_v50   ;;  %254 = vperm.xlu1 %474, %v248_v50  }
 0x188   :  { %266 = vrot.lane.b32.xlu0 %v176_v45, %s512_s10  ;;  %476 = vset.pattern.permute.xlu1 %v513_v52 }
 0x189   :  { %272 = vperm.xlu1 %476, %v248_v50   ;;  %479 = vset.pattern.permute.xlu0 %v514_v53 }
 0x18c   :  { %291 = vrot.lane.b32.xlu0 %v177_v46, %s509_s0 }
 0x18d   :  { %477 = vset.pattern.permute.xlu1 %v515_v54 }
 0x18e   :  { %281 = vperm.xlu1 %477, %v248_v50  }
 0x192   :  { %478 = vset.pattern.permute.xlu1 %v514_v53 }
 0x193   :  { %288 = vperm.xlu1 %478, %v248_v50  }
 0x197   :  { %275 = vrot.lane.b32.xlu1 %v176_v45, %s516_s13 }
 0x203   :  { %v255_v61 = vpop.permute.xlu1 %254  ;;  %v264_v0 = vpop.permute.xlu0 %263 }
 0x204   :  { %v260_v9 = vmul.f32 %v258_v62, %v255_v61 }
 0x206   :  { %v261_v6 = vadd.f32 %v260_v9, %v251_v4 }
 0x207   :  { %v267_v2 = vpop.permute.xlu0 %266 }
 0x208   :  { %v273_v63 = vpop.permute.xlu1 %272  ;;  %v269_v5 = vmul.f32 %v267_v2, %v264_v0 }
 0x20a   :  { %v270_v8 = vadd.f32 %v269_v5, %v261_v6 }
 0x20b   :  { %v292_v13 = vpop.permute.xlu0 %291 }
 0x20d   :  { %v282_v1 = vpop.permute.xlu1 %281 }
 0x20e   :  { %v285_v11 = vmul.f32 %v282_v1, %v177_v46 }
 0x212   :  { %v289_v3 = vpop.permute.xlu1 %288 }
 0x213   :  { %v294_v14 = vmul.f32 %v292_v13, %v289_v3 }
 0x216   :  { %v276_v7 = vpop.permute.xlu1 %275 }
 0x217   :  { %v278_v10 = vmul.f32 %v276_v7, %v273_v63 }
 0x219   :  { %v279_v12 = vadd.f32 %v278_v10, %v270_v8 }
 0x21b   :  { %v286_v15 = vadd.f32 %v285_v11, %v279_v12 }
 0x21d   :  { %v295_v26 = vadd.f32 %v294_v14, %v286_v15 }
 0x21f   :  { %413 = vmatmul.mubr.msk.f32.vlgmr.msra.gmra.mrb[0].mxu1 %vm307_vm9, %v295_v26 }
 0x2f2   :  { %v377_v17 = vpop.f32.mrb[0].mxu1 }
 0x2f3   :  { %v378_v18 = vadd.f32 %v397_v16, %v377_v17  ;;  %v414_v19 = vpop.f32.mrb[1].mxu1 }
 0x2f5   :  { %381 = vst [vmem:[#allocation4] sm:$0x3] %v378_v18 }
 0x2f6   :  { %491 = shalt.err (!%p488_p4)
}
 0x2f7   :  { %s492_s23 = scalar_lea.hbm %s710_s7, 32 }
 0x2f8   :  { %p493_p5 = scmp.ne.s32.totalorder %s710_s7, %s492_s23  ;;  %p496_p6 = scmp.lt.u32.totalorder %s492_s23, %s710_s7 }
 0x2fa   :  { %p498_p7 = pnand %p496_p6, %p493_p5 }
 0x2fc   :  { %501 = shalt.err (!%p498_p7)
}
 0x2fd   :  { %391 = dma.vmem_to_hbm [thread:$0]  %s389_s19, 32, %s710_s7, [#allocation5]  }
 0x2fe   :  { %502 = dma.done.wait [#allocation5], 32  }
 0x2ff   :  { %503 = vsyncadd [#allocation5], 4294967264 }
 0x300   :  { %395 = vsyncpa [#allocation5], 1 }

</bundles_post_ra>
